<compile_context>
chip_gen: v6e
topology: v6e:2x2x1
jax: 0.10.0
libtpu: 0.0.40
codegen_flags: <defaults>
</compile_context>

<pallas_src>
import jax
import jax.numpy as jnp
from jax.experimental import pallas as pl
from jax.experimental.pallas import tpu as pltpu


def _embed_norm_kernel(idx_ref, table_ref, out_ref):
    # idx_ref:   SMEM (n,) int32 scalar-prefetch indices
    # table_ref: VMEM (feature_num, emb_dim) f32 -- whole table, resident
    # out_ref:   VMEM (n, emb_dim) f32
    n = out_ref.shape[0]
    # Gather all rows (n is small & static -> unrolled; each read is a dynamic
    # single-sublane slice of the VMEM-resident table, no per-row HBM DMA).
    for j in range(n):
        out_ref[pl.ds(j, 1), :] = table_ref[pl.ds(idx_ref[j], 1), :]
    x = out_ref[...]
    inv = jax.lax.rsqrt(jnp.sum(x * x, keepdims=True))   # (1, 1)
    out_ref[...] = x * inv


def _pair_kernel(lidx_ref, ridx_ref, table_ref, rout_ref, loss_ref, lbuf_ref):
    # lidx_ref/ridx_ref: SMEM (n,) int32 scalar-prefetch indices
    # table_ref:         VMEM (feature_num, emb_dim) f32
    # rout_ref:          VMEM (n, emb_dim) f32  (normalized right embeddings)
    # loss_ref:          VMEM (1, 1) f32        (-sum(left_norm * right_norm))
    # lbuf_ref:          VMEM (n, emb_dim) f32 scratch for raw left rows
    n = rout_ref.shape[0]
    for j in range(n):
        lbuf_ref[pl.ds(j, 1), :] = table_ref[pl.ds(lidx_ref[j], 1), :]
        rout_ref[pl.ds(j, 1), :] = table_ref[pl.ds(ridx_ref[j], 1), :]
    le = lbuf_ref[...]
    re = rout_ref[...]
    ssl = jnp.sum(le * le, keepdims=True)   # (1, 1)
    ssr = jnp.sum(re * re, keepdims=True)
    dot = jnp.sum(le * re, keepdims=True)
    inv_r = jax.lax.rsqrt(ssr)
    rout_ref[...] = re * inv_r
    # loss = sum(le*re) / (||le|| * ||re||); return its negation.
    loss_ref[...] = -(dot * jax.lax.rsqrt(ssl) * inv_r)


@jax.jit
def _forward_single(table, left):
    fnum, d = table.shape
    n = left.size
    idx = jnp.clip(left.reshape(n).astype(jnp.int32), 0, fnum - 1)
    grid_spec = pltpu.PrefetchScalarGridSpec(
        num_scalar_prefetch=1,
        grid=(1,),
        in_specs=[pl.BlockSpec((fnum, d), lambda i, idx_r: (0, 0))],
        out_specs=pl.BlockSpec((n, d), lambda i, idx_r: (0, 0)),
    )
    out = pl.pallas_call(
        _embed_norm_kernel,
        out_shape=jax.ShapeDtypeStruct((n, d), jnp.float32),
        grid_spec=grid_spec,
        compiler_params=pltpu.CompilerParams(
            dimension_semantics=("arbitrary",)),
    )(idx, table)
    return out.reshape(*left.shape, d)


@jax.jit
def _forward_pair(table, left, right):
    fnum, d = table.shape
    n = left.size
    lidx = jnp.clip(left.reshape(n).astype(jnp.int32), 0, fnum - 1)
    ridx = jnp.clip(right.reshape(n).astype(jnp.int32), 0, fnum - 1)
    grid_spec = pltpu.PrefetchScalarGridSpec(
        num_scalar_prefetch=2,
        grid=(1,),
        in_specs=[pl.BlockSpec((fnum, d), lambda i, l, r: (0, 0))],
        out_specs=(
            pl.BlockSpec((n, d), lambda i, l, r: (0, 0)),
            pl.BlockSpec((1, 1), lambda i, l, r: (0, 0)),
        ),
        scratch_shapes=[pltpu.VMEM((n, d), jnp.float32)],
    )
    rout, neg_loss = pl.pallas_call(
        _pair_kernel,
        out_shape=(
            jax.ShapeDtypeStruct((n, d), jnp.float32),
            jax.ShapeDtypeStruct((1, 1), jnp.float32),
        ),
        grid_spec=grid_spec,
        compiler_params=pltpu.CompilerParams(
            dimension_semantics=("arbitrary",)),
    )(lidx, ridx, table)
    return rout.reshape(*left.shape, d), neg_loss[0, 0]


class PallasModel:
    """JAX/Pallas equivalent of the PyTorch Model (forward pass only)."""

    def __init__(self, feature_num, emb_dim=10, key=None):
        if key is None:
            key = jax.random.PRNGKey(0)
        self.feature_num = int(feature_num)
        self.emb_dim = int(emb_dim)
        # nn.Embedding default init: N(0, 1). Table stays un-padded.
        self.table = jax.random.normal(
            key, (self.feature_num, self.emb_dim), dtype=jnp.float32)

    def __call__(self, left, right=None):
        left = jnp.asarray(left)
        if right is None:
            return _forward_single(self.table, left)
        right = jnp.asarray(right)
        return _forward_pair(self.table, left, right)


def _reference(table, left, right=None):
    def embed_norm(idx):
        e = jnp.take(table, idx, axis=0).astype(jnp.float32)
        return e / jnp.sqrt(jnp.sum(e * e))
    le = embed_norm(left)
    if right is None:
        return le
    re = embed_norm(right)
    return re, -jnp.sum(le * re)


if __name__ == "__main__":
    feature_num = 32
    emb_dim = 10
    batch, seq = 2, 8

    key = jax.random.PRNGKey(0)
    k_tab, k_left, k_right = jax.random.split(key, 3)

    model = PallasModel(feature_num, emb_dim, key=k_tab)

    left = jax.random.randint(k_left, (batch, seq), 0, feature_num, dtype=jnp.int32)
    right = jax.random.randint(k_right, (batch, seq), 0, feature_num, dtype=jnp.int32)

    # Path 1: forward(left) -> normalized embeddings.
    left_emb = jax.block_until_ready(model(left))

    # Path 2: forward(left, right) -> (right_emb, -loss).
    right_emb, neg_loss = model(left, right)
    right_emb = jax.block_until_ready(right_emb)
    neg_loss = jax.block_until_ready(neg_loss)

    # Sanity check against a pure-JAX reference.
    ref_left = _reference(model.table, left)
    ref_right, ref_loss = _reference(model.table, left, right)
    assert jnp.allclose(left_emb, ref_left, rtol=1e-5, atol=1e-5)
    assert jnp.allclose(right_emb, ref_right, rtol=1e-5, atol=1e-5)
    assert jnp.allclose(neg_loss, ref_loss, rtol=1e-5, atol=1e-5)

    print("KERNEL_OK")
</pallas_src>

<mosaic_0001>
module attributes {stable_mosaic.version = 11 : i64} {
  func.func @_embed_norm_kernel(%arg0: i32, %arg1: memref<16xi32, #tpu.memory_space<smem>>, %arg2: memref<32x10xf32, #tpu.memory_space<vmem>>, %arg3: memref<16x10xf32, #tpu.memory_space<vmem>>) attributes {dimension_semantics = [#tpu.dimension_semantics<arbitrary>], iteration_bounds = array<i64: 1>, scalar_prefetch = 1 : i64, scratch_operands = 0 : i64, tpu.core_type = #tpu.core_type<tc>, window_params = [{pipeline_mode = #tpu.pipeline_mode<synchronous>, transform_indices = @transform_0, window_bounds = array<i64: 32, 10>}, {pipeline_mode = #tpu.pipeline_mode<synchronous>, transform_indices = @transform_1, window_bounds = array<i64: 16, 10>}]} {
    %c0 = arith.constant 0 : index
    %0 = memref.load %arg1[%c0] : memref<16xi32, #tpu.memory_space<smem>>
    %1 = arith.index_cast %0 : i32 to index
    %c0_0 = arith.constant 0 : index
    %2 = vector.load %arg2[%1, %c0_0] : memref<32x10xf32, #tpu.memory_space<vmem>>, vector<1x10xf32>
    %c0_1 = arith.constant 0 : index
    %c0_2 = arith.constant 0 : index
    %3 = vector.load %arg3[%c0_1, %c0_2] : memref<16x10xf32, #tpu.memory_space<vmem>>, vector<1x10xf32>
    tpu.vector_store %arg3[%c0_1, %c0_2], %2 {strides = array<i32>} : memref<16x10xf32, #tpu.memory_space<vmem>>, vector<1x10xf32>,
    %c1 = arith.constant 1 : index
    %4 = memref.load %arg1[%c1] : memref<16xi32, #tpu.memory_space<smem>>
    %5 = arith.index_cast %4 : i32 to index
    %c0_3 = arith.constant 0 : index
    %6 = vector.load %arg2[%5, %c0_3] : memref<32x10xf32, #tpu.memory_space<vmem>>, vector<1x10xf32>
    %c1_4 = arith.constant 1 : index
    %c0_5 = arith.constant 0 : index
    %7 = vector.load %arg3[%c1_4, %c0_5] : memref<16x10xf32, #tpu.memory_space<vmem>>, vector<1x10xf32>
    tpu.vector_store %arg3[%c1_4, %c0_5], %6 {strides = array<i32>} : memref<16x10xf32, #tpu.memory_space<vmem>>, vector<1x10xf32>,
    %c2 = arith.constant 2 : index
    %8 = memref.load %arg1[%c2] : memref<16xi32, #tpu.memory_space<smem>>
    %9 = arith.index_cast %8 : i32 to index
    %c0_6 = arith.constant 0 : index
    %10 = vector.load %arg2[%9, %c0_6] : memref<32x10xf32, #tpu.memory_space<vmem>>, vector<1x10xf32>
    %c2_7 = arith.constant 2 : index
    %c0_8 = arith.constant 0 : index
    %11 = vector.load %arg3[%c2_7, %c0_8] : memref<16x10xf32, #tpu.memory_space<vmem>>, vector<1x10xf32>
    tpu.vector_store %arg3[%c2_7, %c0_8], %10 {strides = array<i32>} : memref<16x10xf32, #tpu.memory_space<vmem>>, vector<1x10xf32>,
    %c3 = arith.constant 3 : index
    %12 = memref.load %arg1[%c3] : memref<16xi32, #tpu.memory_space<smem>>
    %13 = arith.index_cast %12 : i32 to index
    %c0_9 = arith.constant 0 : index
    %14 = vector.load %arg2[%13, %c0_9] : memref<32x10xf32, #tpu.memory_space<vmem>>, vector<1x10xf32>
    %c3_10 = arith.constant 3 : index
    %c0_11 = arith.constant 0 : index
    %15 = vector.load %arg3[%c3_10, %c0_11] : memref<16x10xf32, #tpu.memory_space<vmem>>, vector<1x10xf32>
    tpu.vector_store %arg3[%c3_10, %c0_11], %14 {strides = array<i32>} : memref<16x10xf32, #tpu.memory_space<vmem>>, vector<1x10xf32>,
    %c4 = arith.constant 4 : index
    %16 = memref.load %arg1[%c4] : memref<16xi32, #tpu.memory_space<smem>>
    %17 = arith.index_cast %16 : i32 to index
    %c0_12 = arith.constant 0 : index
    %18 = vector.load %arg2[%17, %c0_12] : memref<32x10xf32, #tpu.memory_space<vmem>>, vector<1x10xf32>
    %c4_13 = arith.constant 4 : index
    %c0_14 = arith.constant 0 : index
    %19 = vector.load %arg3[%c4_13, %c0_14] : memref<16x10xf32, #tpu.memory_space<vmem>>, vector<1x10xf32>
    tpu.vector_store %arg3[%c4_13, %c0_14], %18 {strides = array<i32>} : memref<16x10xf32, #tpu.memory_space<vmem>>, vector<1x10xf32>,
    %c5 = arith.constant 5 : index
    %20 = memref.load %arg1[%c5] : memref<16xi32, #tpu.memory_space<smem>>
    %21 = arith.index_cast %20 : i32 to index
    %c0_15 = arith.constant 0 : index
    %22 = vector.load %arg2[%21, %c0_15] : memref<32x10xf32, #tpu.memory_space<vmem>>, vector<1x10xf32>
    %c5_16 = arith.constant 5 : index
    %c0_17 = arith.constant 0 : index
    %23 = vector.load %arg3[%c5_16, %c0_17] : memref<16x10xf32, #tpu.memory_space<vmem>>, vector<1x10xf32>
    tpu.vector_store %arg3[%c5_16, %c0_17], %22 {strides = array<i32>} : memref<16x10xf32, #tpu.memory_space<vmem>>, vector<1x10xf32>,
    %c6 = arith.constant 6 : index
    %24 = memref.load %arg1[%c6] : memref<16xi32, #tpu.memory_space<smem>>
    %25 = arith.index_cast %24 : i32 to index
    %c0_18 = arith.constant 0 : index
    %26 = vector.load %arg2[%25, %c0_18] : memref<32x10xf32, #tpu.memory_space<vmem>>, vector<1x10xf32>
    %c6_19 = arith.constant 6 : index
    %c0_20 = arith.constant 0 : index
    %27 = vector.load %arg3[%c6_19, %c0_20] : memref<16x10xf32, #tpu.memory_space<vmem>>, vector<1x10xf32>
    tpu.vector_store %arg3[%c6_19, %c0_20], %26 {strides = array<i32>} : memref<16x10xf32, #tpu.memory_space<vmem>>, vector<1x10xf32>,
    %c7 = arith.constant 7 : index
    %28 = memref.load %arg1[%c7] : memref<16xi32, #tpu.memory_space<smem>>
    %29 = arith.index_cast %28 : i32 to index
    %c0_21 = arith.constant 0 : index
    %30 = vector.load %arg2[%29, %c0_21] : memref<32x10xf32, #tpu.memory_space<vmem>>, vector<1x10xf32>
    %c7_22 = arith.constant 7 : index
    %c0_23 = arith.constant 0 : index
    %31 = vector.load %arg3[%c7_22, %c0_23] : memref<16x10xf32, #tpu.memory_space<vmem>>, vector<1x10xf32>
    tpu.vector_store %arg3[%c7_22, %c0_23], %30 {strides = array<i32>} : memref<16x10xf32, #tpu.memory_space<vmem>>, vector<1x10xf32>,
    %c8 = arith.constant 8 : index
    %32 = memref.load %arg1[%c8] : memref<16xi32, #tpu.memory_space<smem>>
    %33 = arith.index_cast %32 : i32 to index
    %c0_24 = arith.constant 0 : index
    %34 = vector.load %arg2[%33, %c0_24] : memref<32x10xf32, #tpu.memory_space<vmem>>, vector<1x10xf32>
    %c8_25 = arith.constant 8 : index
    %c0_26 = arith.constant 0 : index
    %35 = vector.load %arg3[%c8_25, %c0_26] : memref<16x10xf32, #tpu.memory_space<vmem>>, vector<1x10xf32>
    tpu.vector_store %arg3[%c8_25, %c0_26], %34 {strides = array<i32>} : memref<16x10xf32, #tpu.memory_space<vmem>>, vector<1x10xf32>,
    %c9 = arith.constant 9 : index
    %36 = memref.load %arg1[%c9] : memref<16xi32, #tpu.memory_space<smem>>
    %37 = arith.index_cast %36 : i32 to index
    %c0_27 = arith.constant 0 : index
    %38 = vector.load %arg2[%37, %c0_27] : memref<32x10xf32, #tpu.memory_space<vmem>>, vector<1x10xf32>
    %c9_28 = arith.constant 9 : index
    %c0_29 = arith.constant 0 : index
    %39 = vector.load %arg3[%c9_28, %c0_29] : memref<16x10xf32, #tpu.memory_space<vmem>>, vector<1x10xf32>
    tpu.vector_store %arg3[%c9_28, %c0_29], %38 {strides = array<i32>} : memref<16x10xf32, #tpu.memory_space<vmem>>, vector<1x10xf32>,
    %c10 = arith.constant 10 : index
    %40 = memref.load %arg1[%c10] : memref<16xi32, #tpu.memory_space<smem>>
    %41 = arith.index_cast %40 : i32 to index
    %c0_30 = arith.constant 0 : index
    %42 = vector.load %arg2[%41, %c0_30] : memref<32x10xf32, #tpu.memory_space<vmem>>, vector<1x10xf32>
    %c10_31 = arith.constant 10 : index
    %c0_32 = arith.constant 0 : index
    %43 = vector.load %arg3[%c10_31, %c0_32] : memref<16x10xf32, #tpu.memory_space<vmem>>, vector<1x10xf32>
    tpu.vector_store %arg3[%c10_31, %c0_32], %42 {strides = array<i32>} : memref<16x10xf32, #tpu.memory_space<vmem>>, vector<1x10xf32>,
    %c11 = arith.constant 11 : index
    %44 = memref.load %arg1[%c11] : memref<16xi32, #tpu.memory_space<smem>>
    %45 = arith.index_cast %44 : i32 to index
    %c0_33 = arith.constant 0 : index
    %46 = vector.load %arg2[%45, %c0_33] : memref<32x10xf32, #tpu.memory_space<vmem>>, vector<1x10xf32>
    %c11_34 = arith.constant 11 : index
    %c0_35 = arith.constant 0 : index
    %47 = vector.load %arg3[%c11_34, %c0_35] : memref<16x10xf32, #tpu.memory_space<vmem>>, vector<1x10xf32>
    tpu.vector_store %arg3[%c11_34, %c0_35], %46 {strides = array<i32>} : memref<16x10xf32, #tpu.memory_space<vmem>>, vector<1x10xf32>,
    %c12 = arith.constant 12 : index
    %48 = memref.load %arg1[%c12] : memref<16xi32, #tpu.memory_space<smem>>
    %49 = arith.index_cast %48 : i32 to index
    %c0_36 = arith.constant 0 : index
    %50 = vector.load %arg2[%49, %c0_36] : memref<32x10xf32, #tpu.memory_space<vmem>>, vector<1x10xf32>
    %c12_37 = arith.constant 12 : index
    %c0_38 = arith.constant 0 : index
    %51 = vector.load %arg3[%c12_37, %c0_38] : memref<16x10xf32, #tpu.memory_space<vmem>>, vector<1x10xf32>
    tpu.vector_store %arg3[%c12_37, %c0_38], %50 {strides = array<i32>} : memref<16x10xf32, #tpu.memory_space<vmem>>, vector<1x10xf32>,
    %c13 = arith.constant 13 : index
    %52 = memref.load %arg1[%c13] : memref<16xi32, #tpu.memory_space<smem>>
    %53 = arith.index_cast %52 : i32 to index
    %c0_39 = arith.constant 0 : index
    %54 = vector.load %arg2[%53, %c0_39] : memref<32x10xf32, #tpu.memory_space<vmem>>, vector<1x10xf32>
    %c13_40 = arith.constant 13 : index
    %c0_41 = arith.constant 0 : index
    %55 = vector.load %arg3[%c13_40, %c0_41] : memref<16x10xf32, #tpu.memory_space<vmem>>, vector<1x10xf32>
    tpu.vector_store %arg3[%c13_40, %c0_41], %54 {strides = array<i32>} : memref<16x10xf32, #tpu.memory_space<vmem>>, vector<1x10xf32>,
    %c14 = arith.constant 14 : index
    %56 = memref.load %arg1[%c14] : memref<16xi32, #tpu.memory_space<smem>>
    %57 = arith.index_cast %56 : i32 to index
    %c0_42 = arith.constant 0 : index
    %58 = vector.load %arg2[%57, %c0_42] : memref<32x10xf32, #tpu.memory_space<vmem>>, vector<1x10xf32>
    %c14_43 = arith.constant 14 : index
    %c0_44 = arith.constant 0 : index
    %59 = vector.load %arg3[%c14_43, %c0_44] : memref<16x10xf32, #tpu.memory_space<vmem>>, vector<1x10xf32>
    tpu.vector_store %arg3[%c14_43, %c0_44], %58 {strides = array<i32>} : memref<16x10xf32, #tpu.memory_space<vmem>>, vector<1x10xf32>,
    %c15 = arith.constant 15 : index
    %60 = memref.load %arg1[%c15] : memref<16xi32, #tpu.memory_space<smem>>
    %61 = arith.index_cast %60 : i32 to index
    %c0_45 = arith.constant 0 : index
    %62 = vector.load %arg2[%61, %c0_45] : memref<32x10xf32, #tpu.memory_space<vmem>>, vector<1x10xf32>
    %c15_46 = arith.constant 15 : index
    %c0_47 = arith.constant 0 : index
    %63 = vector.load %arg3[%c15_46, %c0_47] : memref<16x10xf32, #tpu.memory_space<vmem>>, vector<1x10xf32>
    tpu.vector_store %arg3[%c15_46, %c0_47], %62 {strides = array<i32>} : memref<16x10xf32, #tpu.memory_space<vmem>>, vector<1x10xf32>,
    %c0_48 = arith.constant 0 : index
    %c0_49 = arith.constant 0 : index
    %64 = vector.load %arg3[%c0_48, %c0_49] : memref<16x10xf32, #tpu.memory_space<vmem>>, vector<16x10xf32>
    %65 = arith.mulf %64, %64 : vector<16x10xf32>
    %66 = vector.shape_cast %65 : vector<16x10xf32> to vector<1x16x10xf32>
    %cst = arith.constant dense<0.000000e+00> : vector<1xf32>
    %67 = vector.multi_reduction <add>, %66, %cst [1, 2] : vector<1x16x10xf32> to vector<1xf32>
    %68 = vector.shape_cast %67 : vector<1xf32> to vector<1x1x1xf32>
    %69 = vector.extract %68[0, 0, 0] : f32 from vector<1x1x1xf32>
    %70 = vector.broadcast %69 : f32 to vector<1x1xf32>
    %71 = math.rsqrt %70 : vector<1x1xf32>
    %72 = vector.broadcast %71 : vector<1x1xf32> to vector<16x10xf32>
    %73 = arith.mulf %64, %72 : vector<16x10xf32>
    %c0_50 = arith.constant 0 : index
    %c0_51 = arith.constant 0 : index
    %74 = vector.load %arg3[%c0_50, %c0_51] : memref<16x10xf32, #tpu.memory_space<vmem>>, vector<16x10xf32>
    tpu.vector_store %arg3[%c0_50, %c0_51], %73 {strides = array<i32>} : memref<16x10xf32, #tpu.memory_space<vmem>>, vector<16x10xf32>,
    return
  }
  func.func @transform_0(%arg0: i32, %arg1: memref<16xi32, #tpu.memory_space<smem>>) -> (i32, i32) {
    %c0_i32 = arith.constant 0 : i32
    %c0_i32_0 = arith.constant 0 : i32
    %c0_i32_1 = arith.constant 0 : i32
    return %c0_i32, %c0_i32_0 : i32, i32
  }
  func.func @transform_1(%arg0: i32, %arg1: memref<16xi32, #tpu.memory_space<smem>>) -> (i32, i32) {
    %c0_i32 = arith.constant 0 : i32
    %c0_i32_0 = arith.constant 0 : i32
    %c0_i32_1 = arith.constant 0 : i32
    return %c0_i32, %c0_i32_0 : i32, i32
  }
}

</mosaic_0001>

<bundles_post_ra>
// kernel: _forward_single.1
= control target key start
LH: loop header
LB: loop body
LE: loop exit
PB: predicated region body
PF: predicated region fallthrough
CT: control target
= control target key end

     0   :  { %s288_s0 = inlined_call_operand.vmem [shape: s32[16], index: 0, kind: input, shape index: {}]   ;;  %s289_s1 = inlined_call_operand.vmem [shape: f32[32,10], index: 1, kind: input, shape index: {}]   ;;  %s290_s2 = inlined_call_operand.hbm [shape: f32[16,10], index: 2, kind: output, shape index: {}]  }
   0x1   :  { %s7_s11 = sshll.u32 %s288_s0, 4  ;;  %s8_s11 = int_to_ptr.vmem [resolvable:$true] %s7_s11 }
   0x2   :  { %s159_s12 = scalar_lea.vmem %s8_s11, 16  ;;  %p164_p1 = scmp.lt.s32.totalorder %s8_s11, %s8_s11 }
   0x3   :  { %p160_p0 = scmp.ne.s32.totalorder %s8_s11, %s159_s12  ;;  %p165_p2 = scmp.lt.s32.totalorder %s159_s12, %s159_s12 }
   0x5   :  { %p166_p3 = por %p165_p2, %p164_p1 }
   0x7   :  { %p167_p4 = pnand %p166_p3, %p160_p0 }
   0x9   :  { %170 = shalt.err (!%p167_p4)  }
   0xa   :  { %s195_s13 = smov [#allocation3]  }
   0xb   :  { %10 = dma.vmem_to_smem %s8_s11, 16, %s195_s13, [#allocation2] }
   0xc   :  { %191 = dma.done.wait [#allocation2], 16 }
   0xd   :  { %192 = vsyncadd [#allocation2], 4294967280 }
   0xe   :  { %12 = sfence }
   0xf   :  { %s16_s14 = sld [smem:[#allocation3]] }
  0x10   :  { %13 = vsyncpa [#allocation5], 0  ;;  %s136_s15 = sld [smem:[#allocation3 + $0x1]]  ;;  %vm19_vm0 = vcmask 73728   ;;  %vm85_vm1 = vcmask 80896   ;;  %s196_s20 = smov [#allocation4]  }
  0x11   :  { %s137_s16 = sld [smem:[#allocation3 + $0x2]] }
  0x12   :  { %s138_s17 = sld [smem:[#allocation3 + $0x3]] }
  0x13   :  { %s139_s18 = sld [smem:[#allocation3 + $0x4]] }
  0x14   :  { %s140_s0 = sld [smem:[#allocation3 + $0x5]] }
  0x15   :  { %s17_s21 = scalar_lea.vmem %s289_s1, %s16_s14  ;;  %s141_s22 = sld [smem:[#allocation3 + $0x6]] }
  0x16   :  { %v18_v0 = vld [vmem:[%s17_s21] sm:$0x1]  ;;  %s22_s25 = scalar_lea.vmem %s289_s1, %s136_s15  ;;  %s142_s26 = sld [smem:[#allocation3 + $0x7]] }
  0x17   :  { %20 = vst.msk [vmem:[#allocation4] sm:$0x1] %vm19_vm0, %v18_v0  ;;  %v23_v1 = vld [vmem:[%s22_s25] sm:$0x1]  ;;  %s26_s29 = scalar_lea.vmem %s289_s1, %s137_s16  ;;  %s143_s30 = sld [smem:[#allocation3 + $0x8]] }
  0x18   :  { %24 = vst.msk [vmem:[#allocation4 + $0x1] sm:$0x1] %vm19_vm0, %v23_v1  ;;  %v27_v2 = vld [vmem:[%s26_s29] sm:$0x1]  ;;  %s30_s5 = scalar_lea.vmem %s289_s1, %s138_s17  ;;  %s144_s6 = sld [smem:[#allocation3 + $0x9]] }
  0x19   :  { %28 = vst.msk [vmem:[#allocation4 + $0x2] sm:$0x1] %vm19_vm0, %v27_v2  ;;  %v31_v3 = vld [vmem:[%s30_s5] sm:$0x1]  ;;  %s34_s9 = scalar_lea.vmem %s289_s1, %s139_s18  ;;  %s145_s10 = sld [smem:[#allocation3 + $0xa]] }
  0x1a   :  { %32 = vst.msk [vmem:[#allocation4 + $0x3] sm:$0x1] %vm19_vm0, %v31_v3  ;;  %v35_v4 = vld [vmem:[%s34_s9] sm:$0x1]  ;;  %s38_s13 = scalar_lea.vmem %s289_s1, %s140_s0  ;;  %s146_s14 = sld [smem:[#allocation3 + $0xb]] }
  0x1b   :  { %36 = vst.msk [vmem:[#allocation4 + $0x4] sm:$0x1] %vm19_vm0, %v35_v4  ;;  %v39_v5 = vld [vmem:[%s38_s13] sm:$0x1]  ;;  %s42_s17 = scalar_lea.vmem %s289_s1, %s141_s22  ;;  %s147_s19 = sld [smem:[#allocation3 + $0xc]] }
  0x1c   :  { %40 = vst.msk [vmem:[#allocation4 + $0x5] sm:$0x1] %vm19_vm0, %v39_v5  ;;  %v43_v6 = vld [vmem:[%s42_s17] sm:$0x1]  ;;  %s46_s21 = scalar_lea.vmem %s289_s1, %s142_s26  ;;  %s148_s23 = sld [smem:[#allocation3 + $0xd]] }
  0x1d   :  { %44 = vst.msk [vmem:[#allocation4 + $0x6] sm:$0x1] %vm19_vm0, %v43_v6  ;;  %v47_v7 = vld [vmem:[%s46_s21] sm:$0x1]  ;;  %s50_s25 = scalar_lea.vmem %s289_s1, %s143_s30  ;;  %s149_s27 = sld [smem:[#allocation3 + $0xe]] }
  0x1e   :  { %48 = vst.msk [vmem:[#allocation4 + $0x7] sm:$0x1] %vm19_vm0, %v47_v7  ;;  %v51_v8 = vld [vmem:[%s50_s25] sm:$0x1]  ;;  %s54_s29 = scalar_lea.vmem %s289_s1, %s144_s6  ;;  %s150_s3 = sld [smem:[#allocation3 + $0xf]] }
  0x1f   :  { %52 = vst.msk [vmem:[#allocation4 + $0x8] sm:$0x1] %vm19_vm0, %v51_v8  ;;  %v55_v9 = vld [vmem:[%s54_s29] sm:$0x1]  ;;  %s58_s5 = scalar_lea.vmem %s289_s1, %s145_s10  ;;  %s109_s21 = sshll.u32 %s196_s20, 4  ;;  %s110_s21 = int_to_ptr.vmem [resolvable:$true] %s109_s21 }
  0x20   :  { %56 = vst.msk [vmem:[#allocation4 + $0x9] sm:$0x1] %vm19_vm0, %v55_v9  ;;  %v59_v10 = vld [vmem:[%s58_s5] sm:$0x1]  ;;  %s62_s8 = scalar_lea.vmem %s289_s1, %s146_s14  ;;  %p176_p6 = scmp.lt.s32.totalorder %s110_s21, %s110_s21 }
  0x21   :  { %60 = vst.msk [vmem:[#allocation4 + $0xa] sm:$0x1] %vm19_vm0, %v59_v10  ;;  %v63_v11 = vld [vmem:[%s62_s8] sm:$0x1]  ;;  %s66_s11 = scalar_lea.vmem %s289_s1, %s147_s19 }
  0x22   :  { %64 = vst.msk [vmem:[#allocation4 + $0xb] sm:$0x1] %vm19_vm0, %v63_v11  ;;  %v67_v12 = vld [vmem:[%s66_s11] sm:$0x1]  ;;  %s70_s10 = scalar_lea.vmem %s289_s1, %s148_s23  ;;  %s171_s23 = scalar_lea.vmem %s110_s21, 256 }
  0x23   :  { %68 = vst.msk [vmem:[#allocation4 + $0xc] sm:$0x1] %vm19_vm0, %v67_v12  ;;  %v71_v13 = vld [vmem:[%s70_s10] sm:$0x1]  ;;  %s74_s14 = scalar_lea.vmem %s289_s1, %s149_s27  ;;  %p172_p5 = scmp.ne.s32.totalorder %s110_s21, %s171_s23 }
  0x24   :  { %72 = vst.msk [vmem:[#allocation4 + $0xd] sm:$0x1] %vm19_vm0, %v71_v13  ;;  %v75_v14 = vld [vmem:[%s74_s14] sm:$0x1]  ;;  %s78_s19 = scalar_lea.vmem %s289_s1, %s150_s3  ;;  %p177_p7 = scmp.lt.s32.totalorder %s171_s23, %s171_s23 }
  0x25   :  { %76 = vst.msk [vmem:[#allocation4 + $0xe] sm:$0x1] %vm19_vm0, %v75_v14  ;;  %v79_v15 = vld [vmem:[%s78_s19] sm:$0x1] }
  0x26   :  { %80 = vst.msk [vmem:[#allocation4 + $0xf] sm:$0x1] %vm19_vm0, %v79_v15  ;;  %v81_v16 = vld [vmem:[#allocation4] sm:$0xff]  ;;  %p178_p8 = por %p177_p7, %p176_p6 }
  0x27   :  { %v83_v17 = vmul.f32 %v81_v16, %v81_v16 }
  0x28   :  { %p179_p9 = pnand %p178_p8, %p172_p5 }
  0x29   :  { %v86_v20 = vsel %vm85_vm1, %v83_v17, 0.0 }
  0x2d   :  { %v82_v18 = vld [vmem:[#allocation4 + $0x8] sm:$0xff] }
  0x2e   :  { %v84_v19 = vmul.f32 %v82_v18, %v82_v18 }
  0x30   :  { %v87_v21 = vsel %vm85_vm1, %v84_v19, 0.0 }
  0x31   :  { %v88_v22 = vadd.f32 %v87_v21, %v86_v20 }
  0x33   :  { %89 = vadd.xlane.f32.xlu0 %v88_v22 }
  0xbc   :  { %v90_v23 = vpop.xlane.xlu0 %89 }
  0xbd   :  { %v91_v24 = vrot.slane %v90_v23, 4 }
  0xbf   :  { %v92_v25 = vadd.f32 %v91_v24, %v90_v23 }
  0xc1   :  { %v93_v26 = vrot.slane %v92_v25, 2 }
  0xc3   :  { %v94_v27 = vadd.f32 %v93_v26, %v92_v25 }
  0xc5   :  { %v95_v28 = vrot.slane %v94_v27, 1 }
  0xc7   :  { %v96_v29 = vadd.f32 %v95_v28, %v94_v27 }
  0xc9   :  { %151 = vpush %v96_v29 }
  0xfa   :  { %s152_s1 = spop %151 }
  0xfb   :  { %v98_v30 = vstv %s152_s1 }
  0xfc   :  { %157 = vrsqrt.f32 %v98_v30 }
 0x109   :  { %v158_v31 = vpop.eup %157 }
 0x10a   :  { %v100_v32 = vmul.f32 %v158_v31, %v81_v16  ;;  %v101_v33 = vmul.f32 %v158_v31, %v82_v18 }
 0x10c   :  { %102 = vst.msk [vmem:[#allocation4] sm:$0xff] %vm85_vm1, %v100_v32  ;;  %103 = vst.msk [vmem:[#allocation4 + $0x8] sm:$0xff] %vm85_vm1, %v101_v33 }
 0x10d   :  { %182 = shalt.err (!%p179_p9)
}
 0x10e   :  { %s197_s0 = smov 128   ;;  %s198_s24 = smov 8  }
 0x10f   :  { %115 = dma.vmem_to_hbm [thread:$0]  %s110_s21, 256, %s290_s2, [#allocation5], %s197_s0, %s197_s0, %s198_s24  }
 0x110   :  { %193 = dma.done.wait [#allocation5], 256  }
 0x111   :  { %194 = vsyncadd [#allocation5], 4294967040 }
 0x112   :  { %119 = vsyncpa [#allocation5], 1 }

</bundles_post_ra>
